<compile_context>
chip_gen: v7x
topology: tpu7x:2x2x1
jax: 0.10.0
libtpu: 0.0.40
codegen_flags: <defaults>
</compile_context>

<pallas_src>
import jax
import jax.numpy as jnp
from jax.experimental import pallas as pl
from jax.experimental.pallas import tpu as pltpu

LOG_STD_MAX = 2.0
LOG_STD_MIN = -5.0
_LOGSTD_MID = 0.5 * (LOG_STD_MAX + LOG_STD_MIN)   # -1.5
_LOGSTD_HALF = 0.5 * (LOG_STD_MAX - LOG_STD_MIN)  #  3.5

OBS_DIM = 17      # HalfCheetah-v4 single_observation_space.shape = (17,)
ACT_DIM = 6       # HalfCheetah-v4 single_action_space.shape = (6,)
K = 5
H1, H2, H3 = 512, 512, 256

HEAD_DIM = K + 2 * K * ACT_DIM      # 5 + 30 + 30 = 65 real head columns
HEAD_PAD = 128                      # lane-dense fused head output width
MEAN_OFF = K
LOGSTD_OFF = K + K * ACT_DIM


def _round_up(x, m):
    return ((x + m - 1) // m) * m


def _choose_tile_b(batch):
    """Pick the batch tile: one tile for rollout-sized batches; for larger
    batches aim for >=2 grid steps (v7x has 2 TensorCores) with a 512 cap."""
    b8 = _round_up(batch, 8)
    if b8 <= 128:
        return b8
    return min(512, _round_up((b8 + 1) // 2, 8))


def actor_kernel(
    x_ref,
    w1_ref, b1_ref,
    w2_ref, b2_ref,
    w3_ref, b3_ref,
    wh_ref, bh_ref,
    out_ref,
):
    # fc1 + ReLU (bf16 matmul inputs, f32 accumulate, f32 elementwise,
    # bf16 downcast fused into the ReLU so the inter-layer value is bf16)
    x = x_ref[...].astype(jnp.bfloat16)
    h = jnp.dot(x, w1_ref[...], preferred_element_type=jnp.float32) + b1_ref[...]
    h = jnp.maximum(h, 0.0).astype(jnp.bfloat16)

    # fc2 + ReLU
    h = jnp.dot(h, w2_ref[...], preferred_element_type=jnp.float32) + b2_ref[...]
    h = jnp.maximum(h, 0.0).astype(jnp.bfloat16)

    # fc3 + ReLU -> feat
    feat = jnp.dot(h, w3_ref[...], preferred_element_type=jnp.float32) + b3_ref[...]
    feat = jnp.maximum(feat, 0.0).astype(jnp.bfloat16)

    # fused heads: [logits(5) | mean(30) | log_std(30) | zero-pad(63)]
    heads = jnp.dot(feat, wh_ref[...], preferred_element_type=jnp.float32) + bh_ref[...]

    # tanh-squash only the log_std lanes; stay lane-dense via a column mask.
    col = jax.lax.broadcasted_iota(jnp.int32, heads.shape, 1)
    is_logstd = (col >= LOGSTD_OFF) & (col < LOGSTD_OFF + K * ACT_DIM)
    squashed = _LOGSTD_MID + _LOGSTD_HALF * jnp.tanh(heads)
    out_ref[...] = jnp.where(is_logstd, squashed, heads)


def init_params(key):
    """PyTorch nn.Linear-style uniform init; weights stored (in, out)."""
    def linear(key, fan_in, fan_out):
        kw, kb = jax.random.split(key)
        bound = 1.0 / jnp.sqrt(fan_in)
        w = jax.random.uniform(kw, (fan_in, fan_out), jnp.float32, -bound, bound)
        b = jax.random.uniform(kb, (1, fan_out), jnp.float32, -bound, bound)
        return w, b

    keys = jax.random.split(key, 6)
    return {
        "fc1": linear(keys[0], OBS_DIM, H1),
        "fc2": linear(keys[1], H1, H2),
        "fc3": linear(keys[2], H2, H3),
        "fc_logits": linear(keys[3], H3, K),
        "fc_mean": linear(keys[4], H3, K * ACT_DIM),
        "fc_logstd": linear(keys[5], H3, K * ACT_DIM),
    }


def pack_params(params):
    """Kernel-ready params: bf16 weights, fused+lane-padded heads, f32 biases."""
    wlg, blg = params["fc_logits"]
    wmu, bmu = params["fc_mean"]
    wls, bls = params["fc_logstd"]
    wh = jnp.zeros((H3, HEAD_PAD), jnp.float32).at[:, :HEAD_DIM].set(
        jnp.concatenate([wlg, wmu, wls], axis=1))
    bh = jnp.zeros((1, HEAD_PAD), jnp.float32).at[:, :HEAD_DIM].set(
        jnp.concatenate([blg, bmu, bls], axis=1))

    bf16 = lambda a: a.astype(jnp.bfloat16)
    return {
        "w1": bf16(params["fc1"][0]), "b1": params["fc1"][1],
        "w2": bf16(params["fc2"][0]), "b2": params["fc2"][1],
        "w3": bf16(params["fc3"][0]), "b3": params["fc3"][1],
        "wh": bf16(wh), "bh": bh,
    }


@jax.jit
def actor_forward(x, kp):
    B = x.shape[0]
    tile_b = _choose_tile_b(B)
    b_pad = _round_up(B, tile_b)

    # Batch-pad only (no obs-column padding); OBS_DIM=17 equals the full array
    # dim so a (tile_b, 17) block is legal.
    if b_pad == B:
        xp = x
    else:
        xp = jnp.zeros((b_pad, OBS_DIM), x.dtype).at[:B].set(x)

    grid = (b_pad // tile_b,)
    row_block = lambda shape: pl.BlockSpec(shape, lambda i: (i, 0))
    resident = lambda shape: pl.BlockSpec(shape, lambda i: (0, 0))

    out = pl.pallas_call(
        actor_kernel,
        out_shape=jax.ShapeDtypeStruct((b_pad, HEAD_PAD), jnp.float32),
        grid=grid,
        in_specs=[
            row_block((tile_b, OBS_DIM)),
            resident((OBS_DIM, H1)), resident((1, H1)),
            resident((H1, H2)), resident((1, H2)),
            resident((H2, H3)), resident((1, H3)),
            resident((H3, HEAD_PAD)), resident((1, HEAD_PAD)),
        ],
        out_specs=row_block((tile_b, HEAD_PAD)),
        compiler_params=pltpu.CompilerParams(
            dimension_semantics=("parallel",),
            vmem_limit_bytes=16 << 20,
        ),
    )(xp, kp["w1"], kp["b1"], kp["w2"], kp["b2"],
      kp["w3"], kp["b3"], kp["wh"], kp["bh"])

    logits = out[:B, :K]
    mean = out[:B, MEAN_OFF:MEAN_OFF + K * ACT_DIM].reshape(B, K, ACT_DIM)
    log_std = out[:B, LOGSTD_OFF:LOGSTD_OFF + K * ACT_DIM].reshape(B, K, ACT_DIM)
    return logits, mean, log_std


def actor_forward_ref(x, params):
    """Pure-JAX reference matching the kernel's numerics (bf16 matmul inputs)."""
    def mm(a, w):
        return jnp.dot(a.astype(jnp.bfloat16), w.astype(jnp.bfloat16),
                       preferred_element_type=jnp.float32)

    h = jax.nn.relu(mm(x, params["fc1"][0]) + params["fc1"][1])
    h = jax.nn.relu(mm(h, params["fc2"][0]) + params["fc2"][1])
    feat = jax.nn.relu(mm(h, params["fc3"][0]) + params["fc3"][1])
    logits = mm(feat, params["fc_logits"][0]) + params["fc_logits"][1]
    mean = mm(feat, params["fc_mean"][0]) + params["fc_mean"][1]
    log_std = mm(feat, params["fc_logstd"][0]) + params["fc_logstd"][1]
    log_std = _LOGSTD_MID + _LOGSTD_HALF * jnp.tanh(log_std)
    B = x.shape[0]
    return logits, mean.reshape(B, K, ACT_DIM), log_std.reshape(B, K, ACT_DIM)


if __name__ == "__main__":
    key = jax.random.PRNGKey(0)
    pkey, xkey = jax.random.split(key)
    params = init_params(pkey)
    kp = pack_params(params)

    # Small-batch (rollout-path) run: single grid step.
    B = 8
    x = jax.random.normal(xkey, (B, OBS_DIM), dtype=jnp.float32)
    logits, mean, log_std = actor_forward(x, kp)
    jax.block_until_ready((logits, mean, log_std))

    assert logits.shape == (B, K)
    assert mean.shape == (B, K, ACT_DIM)
    assert log_std.shape == (B, K, ACT_DIM)

    rl, rm, rs = actor_forward_ref(x, params)
    assert jnp.allclose(logits, rl, atol=2e-3, rtol=2e-3)
    assert jnp.allclose(mean, rm, atol=2e-3, rtol=2e-3)
    assert jnp.allclose(log_std, rs, atol=2e-3, rtol=2e-3)

    # Larger, non-tile-aligned batch to exercise the multi-step grid + padding.
    x2 = jax.random.normal(jax.random.PRNGKey(1), (200, OBS_DIM), jnp.float32)
    l2, m2, s2 = actor_forward(x2, kp)
    jax.block_until_ready((l2, m2, s2))
    rl2, rm2, rs2 = actor_forward_ref(x2, params)
    assert jnp.allclose(l2, rl2, atol=2e-3, rtol=2e-3)
    assert jnp.allclose(m2, rm2, atol=2e-3, rtol=2e-3)
    assert jnp.allclose(s2, rs2, atol=2e-3, rtol=2e-3)

    print("KERNEL_OK")
</pallas_src>

<mosaic_0001>
module attributes {stable_mosaic.version = 11 : i64} {
  func.func @actor_kernel(%arg0: i32, %arg1: memref<8x17xf32, #tpu.memory_space<vmem>>, %arg2: memref<17x512xbf16, #tpu.memory_space<vmem>>, %arg3: memref<1x512xf32, #tpu.memory_space<vmem>>, %arg4: memref<512x512xbf16, #tpu.memory_space<vmem>>, %arg5: memref<1x512xf32, #tpu.memory_space<vmem>>, %arg6: memref<512x256xbf16, #tpu.memory_space<vmem>>, %arg7: memref<1x256xf32, #tpu.memory_space<vmem>>, %arg8: memref<256x128xbf16, #tpu.memory_space<vmem>>, %arg9: memref<1x128xf32, #tpu.memory_space<vmem>>, %arg10: memref<8x128xf32, #tpu.memory_space<vmem>>) attributes {dimension_semantics = [#tpu.dimension_semantics<parallel>], iteration_bounds = array<i64: 1>, scalar_prefetch = 0 : i64, scratch_operands = 0 : i64, tpu.core_type = #tpu.core_type<tc>, window_params = [{transform_indices = @transform_0, window_bounds = array<i64: 8, 17>}, {pipeline_mode = #tpu.pipeline_mode<synchronous>, transform_indices = @transform_1, window_bounds = array<i64: 17, 512>}, {pipeline_mode = #tpu.pipeline_mode<synchronous>, transform_indices = @transform_2, window_bounds = array<i64: 1, 512>}, {pipeline_mode = #tpu.pipeline_mode<synchronous>, transform_indices = @transform_3, window_bounds = array<i64: 512, 512>}, {pipeline_mode = #tpu.pipeline_mode<synchronous>, transform_indices = @transform_4, window_bounds = array<i64: 1, 512>}, {pipeline_mode = #tpu.pipeline_mode<synchronous>, transform_indices = @transform_5, window_bounds = array<i64: 512, 256>}, {pipeline_mode = #tpu.pipeline_mode<synchronous>, transform_indices = @transform_6, window_bounds = array<i64: 1, 256>}, {pipeline_mode = #tpu.pipeline_mode<synchronous>, transform_indices = @transform_7, window_bounds = array<i64: 256, 128>}, {pipeline_mode = #tpu.pipeline_mode<synchronous>, transform_indices = @transform_8, window_bounds = array<i64: 1, 128>}, {transform_indices = @transform_9, window_bounds = array<i64: 8, 128>}]} {
    %c0 = arith.constant 0 : index
    %c0_0 = arith.constant 0 : index
    %0 = vector.load %arg1[%c0, %c0_0] : memref<8x17xf32, #tpu.memory_space<vmem>>, vector<8x17xf32>
    %1 = arith.truncf %0 : vector<8x17xf32> to vector<8x17xbf16>
    %c0_1 = arith.constant 0 : index
    %c0_2 = arith.constant 0 : index
    %2 = vector.load %arg2[%c0_1, %c0_2] : memref<17x512xbf16, #tpu.memory_space<vmem>>, vector<17x512xbf16>
    %cst = arith.constant dense<0.000000e+00> : vector<8x512xf32>
    %3 = tpu.matmul %1, %2, %cst {dimension_numbers = #tpu.dot_dimension_numbers<[1], [0], [0], [1], [0, 0, 1, 1], [], []>} : vector<8x17xbf16>, vector<17x512xbf16>, vector<8x512xf32> -> vector<8x512xf32>
    %c0_3 = arith.constant 0 : index
    %c0_4 = arith.constant 0 : index
    %4 = vector.load %arg3[%c0_3, %c0_4] : memref<1x512xf32, #tpu.memory_space<vmem>>, vector<1x512xf32>
    %5 = vector.broadcast %4 : vector<1x512xf32> to vector<8x512xf32>
    %6 = arith.addf %3, %5 : vector<8x512xf32>
    %cst_5 = arith.constant 0.000000e+00 : f32
    %7 = vector.broadcast %cst_5 : f32 to vector<8x512xf32>
    %8 = arith.maximumf %6, %7 : vector<8x512xf32>
    %9 = arith.truncf %8 : vector<8x512xf32> to vector<8x512xbf16>
    %c0_6 = arith.constant 0 : index
    %c0_7 = arith.constant 0 : index
    %10 = vector.load %arg4[%c0_6, %c0_7] : memref<512x512xbf16, #tpu.memory_space<vmem>>, vector<512x512xbf16>
    %cst_8 = arith.constant dense<0.000000e+00> : vector<8x512xf32>
    %11 = tpu.matmul %9, %10, %cst_8 {dimension_numbers = #tpu.dot_dimension_numbers<[1], [0], [0], [1], [0, 0, 1, 1], [], []>} : vector<8x512xbf16>, vector<512x512xbf16>, vector<8x512xf32> -> vector<8x512xf32>
    %c0_9 = arith.constant 0 : index
    %c0_10 = arith.constant 0 : index
    %12 = vector.load %arg5[%c0_9, %c0_10] : memref<1x512xf32, #tpu.memory_space<vmem>>, vector<1x512xf32>
    %13 = vector.broadcast %12 : vector<1x512xf32> to vector<8x512xf32>
    %14 = arith.addf %11, %13 : vector<8x512xf32>
    %cst_11 = arith.constant 0.000000e+00 : f32
    %15 = vector.broadcast %cst_11 : f32 to vector<8x512xf32>
    %16 = arith.maximumf %14, %15 : vector<8x512xf32>
    %17 = arith.truncf %16 : vector<8x512xf32> to vector<8x512xbf16>
    %c0_12 = arith.constant 0 : index
    %c0_13 = arith.constant 0 : index
    %18 = vector.load %arg6[%c0_12, %c0_13] : memref<512x256xbf16, #tpu.memory_space<vmem>>, vector<512x256xbf16>
    %cst_14 = arith.constant dense<0.000000e+00> : vector<8x256xf32>
    %19 = tpu.matmul %17, %18, %cst_14 {dimension_numbers = #tpu.dot_dimension_numbers<[1], [0], [0], [1], [0, 0, 1, 1], [], []>} : vector<8x512xbf16>, vector<512x256xbf16>, vector<8x256xf32> -> vector<8x256xf32>
    %c0_15 = arith.constant 0 : index
    %c0_16 = arith.constant 0 : index
    %20 = vector.load %arg7[%c0_15, %c0_16] : memref<1x256xf32, #tpu.memory_space<vmem>>, vector<1x256xf32>
    %21 = vector.broadcast %20 : vector<1x256xf32> to vector<8x256xf32>
    %22 = arith.addf %19, %21 : vector<8x256xf32>
    %cst_17 = arith.constant 0.000000e+00 : f32
    %23 = vector.broadcast %cst_17 : f32 to vector<8x256xf32>
    %24 = arith.maximumf %22, %23 : vector<8x256xf32>
    %25 = arith.truncf %24 : vector<8x256xf32> to vector<8x256xbf16>
    %c0_18 = arith.constant 0 : index
    %c0_19 = arith.constant 0 : index
    %26 = vector.load %arg8[%c0_18, %c0_19] : memref<256x128xbf16, #tpu.memory_space<vmem>>, vector<256x128xbf16>
    %cst_20 = arith.constant dense<0.000000e+00> : vector<8x128xf32>
    %27 = tpu.matmul %25, %26, %cst_20 {dimension_numbers = #tpu.dot_dimension_numbers<[1], [0], [0], [1], [0, 0, 1, 1], [], []>} : vector<8x256xbf16>, vector<256x128xbf16>, vector<8x128xf32> -> vector<8x128xf32>
    %c0_21 = arith.constant 0 : index
    %c0_22 = arith.constant 0 : index
    %28 = vector.load %arg9[%c0_21, %c0_22] : memref<1x128xf32, #tpu.memory_space<vmem>>, vector<1x128xf32>
    %29 = vector.broadcast %28 : vector<1x128xf32> to vector<8x128xf32>
    %30 = arith.addf %27, %29 : vector<8x128xf32>
    %31 = tpu.iota {dimensions = array<i32: 1>} : vector<8x128xi32>
    %c35_i32 = arith.constant 35 : i32
    %32 = vector.broadcast %c35_i32 : i32 to vector<8x128xi32>
    %33 = arith.cmpi sge, %31, %32 : vector<8x128xi32>
    %c65_i32 = arith.constant 65 : i32
    %34 = vector.broadcast %c65_i32 : i32 to vector<8x128xi32>
    %35 = arith.cmpi slt, %31, %34 : vector<8x128xi32>
    %36 = arith.andi %33, %35 : vector<8x128xi1>
    %37 = math.tanh %30 : vector<8x128xf32>
    %cst_23 = arith.constant 3.500000e+00 : f32
    %38 = vector.broadcast %cst_23 : f32 to vector<8x128xf32>
    %39 = arith.mulf %38, %37 : vector<8x128xf32>
    %cst_24 = arith.constant -1.500000e+00 : f32
    %40 = vector.broadcast %cst_24 : f32 to vector<8x128xf32>
    %41 = arith.addf %40, %39 : vector<8x128xf32>
    %42 = arith.select %36, %41, %30 : vector<8x128xi1>, vector<8x128xf32>
    %c0_25 = arith.constant 0 : index
    %c0_26 = arith.constant 0 : index
    %43 = vector.load %arg10[%c0_25, %c0_26] : memref<8x128xf32, #tpu.memory_space<vmem>>, vector<8x128xf32>
    tpu.vector_store %arg10[%c0_25, %c0_26], %42 {strides = array<i32>} : memref<8x128xf32, #tpu.memory_space<vmem>>, vector<8x128xf32>,
    return
  }
  func.func @transform_0(%arg0: i32) -> (i32, i32) {
    %c0_i32 = arith.constant 0 : i32
    %c0_i32_0 = arith.constant 0 : i32
    return %arg0, %c0_i32 : i32, i32
  }
  func.func @transform_1(%arg0: i32) -> (i32, i32) {
    %c0_i32 = arith.constant 0 : i32
    %c0_i32_0 = arith.constant 0 : i32
    %c0_i32_1 = arith.constant 0 : i32
    return %c0_i32, %c0_i32_0 : i32, i32
  }
  func.func @transform_2(%arg0: i32) -> (i32, i32) {
    %c0_i32 = arith.constant 0 : i32
    %c0_i32_0 = arith.constant 0 : i32
    %c0_i32_1 = arith.constant 0 : i32
    return %c0_i32, %c0_i32_0 : i32, i32
  }
  func.func @transform_3(%arg0: i32) -> (i32, i32) {
    %c0_i32 = arith.constant 0 : i32
    %c0_i32_0 = arith.constant 0 : i32
    %c0_i32_1 = arith.constant 0 : i32
    return %c0_i32, %c0_i32_0 : i32, i32
  }
  func.func @transform_4(%arg0: i32) -> (i32, i32) {
    %c0_i32 = arith.constant 0 : i32
    %c0_i32_0 = arith.constant 0 : i32
    %c0_i32_1 = arith.constant 0 : i32
    return %c0_i32, %c0_i32_0 : i32, i32
  }
  func.func @transform_5(%arg0: i32) -> (i32, i32) {
    %c0_i32 = arith.constant 0 : i32
    %c0_i32_0 = arith.constant 0 : i32
    %c0_i32_1 = arith.constant 0 : i32
    return %c0_i32, %c0_i32_0 : i32, i32
  }
  func.func @transform_6(%arg0: i32) -> (i32, i32) {
    %c0_i32 = arith.constant 0 : i32
    %c0_i32_0 = arith.constant 0 : i32
    %c0_i32_1 = arith.constant 0 : i32
    return %c0_i32, %c0_i32_0 : i32, i32
  }
  func.func @transform_7(%arg0: i32) -> (i32, i32) {
    %c0_i32 = arith.constant 0 : i32
    %c0_i32_0 = arith.constant 0 : i32
    %c0_i32_1 = arith.constant 0 : i32
    return %c0_i32, %c0_i32_0 : i32, i32
  }
  func.func @transform_8(%arg0: i32) -> (i32, i32) {
    %c0_i32 = arith.constant 0 : i32
    %c0_i32_0 = arith.constant 0 : i32
    %c0_i32_1 = arith.constant 0 : i32
    return %c0_i32, %c0_i32_0 : i32, i32
  }
  func.func @transform_9(%arg0: i32) -> (i32, i32) {
    %c0_i32 = arith.constant 0 : i32
    %c0_i32_0 = arith.constant 0 : i32
    return %arg0, %c0_i32 : i32, i32
  }
}

</mosaic_0001>

<bundles_post_ra>
// kernel: actor_forward.1
= control target key start
LH: loop header
LB: loop body
LE: loop exit
PB: predicated region body
PF: predicated region fallthrough
CT: control target
= control target key end

     0   :  { %14 = vsyncpa [#allocation3], 0  ;;  %s2836_s0 = inlined_call_operand.hbm [shape: f32[8,17], index: 0, kind: input, shape index: {}]   ;;  %s2837_s1 = inlined_call_operand.hbm [shape: bf16[17,512], index: 1, kind: input, shape index: {}]   ;;  %s2838_s2 = inlined_call_operand.hbm [shape: f32[1,512], index: 2, kind: input, shape index: {}]   ;;  %s2839_s3 = inlined_call_operand.hbm [shape: bf16[512,512], index: 3, kind: input, shape index: {}]   ;;  %s2840_s4 = inlined_call_operand.vmem [shape: f32[1,512], index: 4, kind: input, shape index: {}]   ;;  %s2841_s5 = inlined_call_operand.hbm [shape: bf16[512,256], index: 5, kind: input, shape index: {}]   ;;  %s2842_s6 = inlined_call_operand.vmem [shape: f32[1,256], index: 6, kind: input, shape index: {}]   ;;  %s2843_s7 = inlined_call_operand.hbm [shape: bf16[256,128], index: 7, kind: input, shape index: {}]   ;;  %s2844_s8 = inlined_call_operand.vmem [shape: f32[1,128], index: 8, kind: input, shape index: {}]   ;;  %s2845_s9 = inlined_call_operand.vmem [shape: f32[8,128], index: 9, kind: output, shape index: {}]  }
   0x1   :  { %15 = vsyncpa [#allocation5], 0 }
   0x2   :  { %16 = vsyncpa [#allocation8], 0 }
   0x3   :  { %17 = vsyncpa [#allocation11], 0  ;;  %s2643_s30 = smov [#allocation4]   ;;  %s2503_s13 = scalar_lea.hbm %s2837_s1, 768 }
   0x4   :  { %s33_s10 = sshll.u32 %s2643_s30, 4  ;;  %p2504_p0 = scmp.ne.s32.totalorder %s2837_s1, %s2503_s13  ;;  %s34_s10 = int_to_ptr.vmem [resolvable:$true] %s33_s10 }
   0x5   :  { %p2507_p1 = scmp.lt.u32.totalorder %s2503_s13, %s2837_s1 }
   0x7   :  { %p2509_p2 = pnand %p2507_p1, %p2504_p0 }
   0x9   :  { %2512 = shalt.err (!%p2509_p2)
}
   0xa   :  { %s2513_s18 = scalar_lea.vmem %s34_s10, 768  ;;  %p2518_p4 = scmp.lt.s32.totalorder %s34_s10, %s34_s10 }
   0xb   :  { %p2514_p3 = scmp.ne.s32.totalorder %s34_s10, %s2513_s18  ;;  %p2519_p5 = scmp.lt.s32.totalorder %s2513_s18, %s2513_s18 }
   0xd   :  { %p2520_p6 = por %p2519_p5, %p2518_p4 }
   0xf   :  { %p2521_p7 = pnand %p2520_p6, %p2514_p3 }
  0x11   :  { %2524 = shalt.err (!%p2521_p7)
}
  0x12   :  { %s2644_s19 = smov 256   ;;  %s2645_s20 = smov 16  }
  0x13   :  { %39 = dma.hbm_to_vmem [thread:$0]  %s2837_s1, 768, %s34_s10, [#allocation5], %s2644_s19, %s2644_s19, %s2645_s20  }
  0x14   :  { %s2646_s23 = smov [#allocation7]   ;;  %s2647_s25 = smov [#allocation2]  }
  0x15   :  { %s55_s24 = sshll.u32 %s2646_s23, 4  ;;  %s24_s26 = sshll.u32 %s2647_s25, 4  ;;  %s56_s24 = int_to_ptr.vmem [resolvable:$true] %s55_s24  ;;  %s25_s26 = int_to_ptr.vmem [resolvable:$true] %s24_s26 }
  0x16   :  { %s2525_s29 = scalar_lea.hbm %s2839_s3, 16384 }
  0x17   :  { %p2526_p8 = scmp.ne.s32.totalorder %s2839_s3, %s2525_s29  ;;  %p2529_p9 = scmp.lt.u32.totalorder %s2525_s29, %s2839_s3 }
  0x19   :  { %p2531_p10 = pnand %p2529_p9, %p2526_p8 }
  0x1b   :  { %2534 = shalt.err (!%p2531_p10)
}
  0x1c   :  { %s2535_s1 = scalar_lea.vmem %s56_s24, 16384  ;;  %p2540_p12 = scmp.lt.s32.totalorder %s56_s24, %s56_s24 }
  0x1d   :  { %p2536_p11 = scmp.ne.s32.totalorder %s56_s24, %s2535_s1  ;;  %p2541_p13 = scmp.lt.s32.totalorder %s2535_s1, %s2535_s1 }
  0x1f   :  { %p2542_p0 = por %p2541_p13, %p2540_p12 }
  0x21   :  { %p2543_p1 = pnand %p2542_p0, %p2536_p11 }
  0x23   :  { %2546 = shalt.err (!%p2543_p1)
}
  0x24   :  { %61 = dma.hbm_to_vmem [thread:$0]  %s2839_s3, 16384, %s56_s24, [#allocation8], %s2644_s19, %s2644_s19, %s2645_s20  }
  0x25   :  { %s2547_s17 = scalar_lea.hbm %s2836_s0, 128 }
  0x26   :  { %p2548_p2 = scmp.ne.s32.totalorder %s2836_s0, %s2547_s17  ;;  %p2551_p3 = scmp.lt.u32.totalorder %s2547_s17, %s2836_s0 }
  0x28   :  { %p2553_p4 = pnand %p2551_p3, %p2548_p2 }
  0x2a   :  { %2556 = shalt.err (!%p2553_p4)
}
  0x2b   :  { %s2557_s25 = scalar_lea.vmem %s25_s26, 128  ;;  %p2562_p6 = scmp.lt.s32.totalorder %s25_s26, %s25_s26 }
  0x2c   :  { %p2558_p5 = scmp.ne.s32.totalorder %s25_s26, %s2557_s25  ;;  %p2563_p7 = scmp.lt.s32.totalorder %s2557_s25, %s2557_s25 }
  0x2e   :  { %p2564_p8 = por %p2563_p7, %p2562_p6 }
  0x30   :  { %p2565_p9 = pnand %p2564_p8, %p2558_p5 }
  0x32   :  { %2568 = shalt.err (!%p2565_p9)
}
  0x33   :  { %27 = dma.hbm_to_vmem [thread:$0]  %s2836_s0, 128, %s25_s26, [#allocation3]  }
  0x34   :  { %s2648_s20 = smov [#allocation6]   ;;  %s2649_s27 = smov [#allocation9]  }
  0x35   :  { %s46_s24 = sshll.u32 %s2648_s20, 4  ;;  %s69_s28 = sshll.u32 %s2649_s27, 4  ;;  %s47_s24 = int_to_ptr.vmem [resolvable:$true] %s46_s24  ;;  %s70_s28 = int_to_ptr.vmem [resolvable:$true] %s69_s28 }
  0x36   :  { %s2569_s11 = scalar_lea.hbm %s2838_s2, 64 }
  0x37   :  { %p2570_p10 = scmp.ne.s32.totalorder %s2838_s2, %s2569_s11  ;;  %p2573_p11 = scmp.lt.u32.totalorder %s2569_s11, %s2838_s2 }
  0x39   :  { %p2575_p12 = pnand %p2573_p11, %p2570_p10 }
  0x3b   :  { %2578 = shalt.err (!%p2575_p12)
}
  0x3c   :  { %s2579_s0 = scalar_lea.vmem %s47_s24, 64  ;;  %p2584_p0 = scmp.lt.s32.totalorder %s47_s24, %s47_s24 }
  0x3d   :  { %p2580_p13 = scmp.ne.s32.totalorder %s47_s24, %s2579_s0  ;;  %p2585_p1 = scmp.lt.s32.totalorder %s2579_s0, %s2579_s0 }
  0x3f   :  { %p2586_p2 = por %p2585_p1, %p2584_p0 }
  0x41   :  { %p2587_p3 = pnand %p2586_p2, %p2580_p13 }
  0x43   :  { %2590 = shalt.err (!%p2587_p3)
}
  0x44   :  { %49 = dma.hbm_to_vmem [thread:$0]  %s2838_s2, 64, %s47_s24, [#allocation5]  }
  0x45   :  { %s2591_s17 = scalar_lea.hbm %s2841_s5, 8192 }
  0x46   :  { %p2592_p4 = scmp.ne.s32.totalorder %s2841_s5, %s2591_s17  ;;  %p2595_p5 = scmp.lt.u32.totalorder %s2591_s17, %s2841_s5 }
  0x48   :  { %p2597_p6 = pnand %p2595_p5, %p2592_p4 }
  0x4a   :  { %2600 = shalt.err (!%p2597_p6)
}
  0x4b   :  { %s2601_s25 = scalar_lea.vmem %s70_s28, 8192  ;;  %p2606_p8 = scmp.lt.s32.totalorder %s70_s28, %s70_s28 }
  0x4c   :  { %p2602_p7 = scmp.ne.s32.totalorder %s70_s28, %s2601_s25  ;;  %p2607_p9 = scmp.lt.s32.totalorder %s2601_s25, %s2601_s25 }
  0x4e   :  { %p2608_p10 = por %p2607_p9, %p2606_p8 }
  0x50   :  { %p2609_p11 = pnand %p2608_p10, %p2602_p7 }
  0x52   :  { %2612 = shalt.err (!%p2609_p11)
}
  0x53   :  { %s2650_s2 = smov 128   ;;  %s2651_s3 = smov 8  }
  0x54   :  { %75 = dma.hbm_to_vmem [thread:$0]  %s2841_s5, 8192, %s70_s28, [#allocation8], %s2650_s2, %s2650_s2, %s2651_s3  }
  0x55   :  { %s2652_s24 = smov [#allocation10]   ;;  %s2613_s11 = scalar_lea.hbm %s2843_s7, 2048 }
  0x56   :  { %s83_s27 = sshll.u32 %s2652_s24, 4  ;;  %p2614_p12 = scmp.ne.s32.totalorder %s2843_s7, %s2613_s11  ;;  %s84_s27 = int_to_ptr.vmem [resolvable:$true] %s83_s27 }
  0x57   :  { %p2617_p13 = scmp.lt.u32.totalorder %s2613_s11, %s2843_s7 }
  0x59   :  { %p2619_p0 = pnand %p2617_p13, %p2614_p12 }
  0x5b   :  { %2622 = shalt.err (!%p2619_p0)
}
  0x5c   :  { %s2623_s0 = scalar_lea.vmem %s84_s27, 2048  ;;  %p2628_p2 = scmp.lt.s32.totalorder %s84_s27, %s84_s27 }
  0x5d   :  { %p2624_p1 = scmp.ne.s32.totalorder %s84_s27, %s2623_s0  ;;  %p2629_p3 = scmp.lt.s32.totalorder %s2623_s0, %s2623_s0 }
  0x5f   :  { %p2630_p4 = por %p2629_p3, %p2628_p2 }
  0x61   :  { %p2631_p5 = pnand %p2630_p4, %p2624_p1 }
  0x63   :  { %2634 = shalt.err (!%p2631_p5)
}
  0x64   :  { %s2653_s5 = smov 64   ;;  %s2654_s28 = smov 4  }
  0x65   :  { %89 = dma.hbm_to_vmem [thread:$0]  %s2843_s7, 2048, %s84_s27, [#allocation11], %s2653_s5, %s2653_s5, %s2654_s28  }
  0x66   :  { %2635 = dma.done.wait [#allocation3], 128  }
  0x67   :  { %2636 = vsyncadd [#allocation3], 4294967168 }
  0x68   :  { %2637 = dma.done.wait [#allocation5], 832  }
  0x69   :  { %2638 = vsyncadd [#allocation5], 4294966464 }
  0x6a   :  { %2639 = dma.done.wait [#allocation8], 24576  }
  0x6b   :  { %2640 = vsyncadd [#allocation8], 4294942720 }
  0x6c   :  { %2641 = dma.done.wait [#allocation11], 2048  }
  0x6d   :  { %2642 = vsyncadd [#allocation11], 4294965248  ;;  %v2655_v0 = vmov 0   ;;  %vm175_vm0 = vcmask 1040384   ;;  %v2187_v1 = vld [vmem:[#allocation4 + $0x4] ss:$16 sps:$4 sm:$0xff]  }
  0x6e   :  { %222 = vmatprep.mubr.bf16.mxu0 %v2655_v0  ;;  %v2189_v2 = vld [vmem:[#allocation4] ss:$16 sps:$4 sm:$0xff]   ;;  %v177_v4 = vsel %vm175_vm0, 65535, %v2655_v0  ;;  %190 = vmatprep.subr.bf16.mxu0 %v2187_v1  ;;  %v111_v7 = vld [vmem:[#allocation2] sm:$0xff]  ;;  %v118_v9 = vld [vmem:[#allocation4 + $0x28] sm:$0x11] }
  0x6f   :  { %v117_v3 = vld [vmem:[#allocation4 + $0x20] sm:$0x11]  ;;  %191 = vmatpush1.bf16.msra.mxu0 %v2189_v2  ;;  %v2194_v8 = vld [vmem:[#allocation4 + $0xc] ss:$16 sps:$4 sm:$0xff]   ;;  %v1924_v12 = vcombine.high %v118_v9, %v118_v9  ;;  %v2197_v13 = vld [vmem:[#allocation7 + $0x4] ss:$16 sps:$4 sm:$0xff]   ;;  %v112_v16 = vpack.c.bf16 %v111_v7, %v111_v7  ;;  %v1923_v18 = vcombine.low %v118_v9, %v118_v9 }
  0x70   :  { %v1922_v5 = vcombine.high %v117_v3, %v117_v3  ;;  %v1921_v6 = vcombine.low %v117_v3, %v117_v3  ;;  %v2199_v14 = vld [vmem:[#allocation7] ss:$16 sps:$4 sm:$0xff]   ;;  %v2200_v15 = vld [vmem:[#allocation7 + $0x24] ss:$16 sps:$4 sm:$0xff]   ;;  %1070 = vmatprep.subr.bf16.mxu1 %v2197_v13  ;;  %vm171_vm1 = vcmask 138240  }
  0x71   :  { %v2192_v17 = vld [vmem:[#allocation4 + $0x8] ss:$16 sps:$4 sm:$0xff]   ;;  %1071 = vmatpush1.bf16.msra.mxu1 %v2199_v14  ;;  %v188_v19 = vand.u32 %v1924_v12, %v177_v4  ;;  %v2202_v20 = vld [vmem:[#allocation7 + $0x20] ss:$16 sps:$4 sm:$0xff]   ;;  %v185_v22 = vand.u32 %v1923_v18, %v177_v4  ;;  %v2289_v14 = vld [vmem:[#allocation7 + $0xc] ss:$16 sps:$4 sm:$0xff]  }
  0x72   :  { %v182_v10 = vand.u32 %v1922_v5, %v177_v4  ;;  %v179_v11 = vand.u32 %v1921_v6, %v177_v4  ;;  %1072 = vmatprep.subr.bf16.mxu1 %v2200_v15  ;;  %v2203_v21 = vld [vmem:[#allocation7 + $0x44] ss:$16 sps:$4 sm:$0xff]   ;;  %v2205_v23 = vld [vmem:[#allocation7 + $0x40] ss:$16 sps:$4 sm:$0xff]  }
  0x73   :  { %v2208_v24 = vld [vmem:[#allocation7 + $0x204] ss:$16 sps:$4 sm:$0xff]   ;;  %v2206_v26 = vld [vmem:[#allocation7 + $0x200] ss:$16 sps:$4 sm:$0xff]  }
  0x74   :  { %192 = vmatprep.subr.bf16.mxu0 %v182_v10  ;;  %v2209_v25 = vld [vmem:[#allocation7 + $0x64] ss:$16 sps:$4 sm:$0xff]   ;;  %v2211_v27 = vld [vmem:[#allocation7 + $0x60] ss:$16 sps:$4 sm:$0xff]  }
  0x75   :  { %193 = vmatpush1.bf16.msra.mxu0 %v179_v11  ;;  %1073 = vmatpush1.bf16.msra.mxu1 %v2202_v20  ;;  %v2214_v28 = vld [vmem:[#allocation7 + $0x224] ss:$16 sps:$4 sm:$0xff]   ;;  %v2212_v30 = vld [vmem:[#allocation7 + $0x220] ss:$16 sps:$4 sm:$0xff]  }
  0x76   :  { %231 = vmatprep.subr.bf16.mxu0 %v2194_v8  ;;  %1074 = vmatprep.subr.bf16.mxu1 %v2203_v21  ;;  %v2215_v29 = vld [vmem:[#allocation7 + $0x84] ss:$16 sps:$4 sm:$0xff]   ;;  %v2217_v31 = vld [vmem:[#allocation7 + $0x80] ss:$16 sps:$4 sm:$0xff]  }
  0x77   :  { %v2220_v32 = vld [vmem:[#allocation7 + $0x244] ss:$16 sps:$4 sm:$0xff]   ;;  %v2218_v34 = vld [vmem:[#allocation7 + $0x240] ss:$16 sps:$4 sm:$0xff]  }
  0x78   :  { %1925 = vmatmul.mubr.msk.bf16.vlgmr.msra.gmra.mrb[0].mxu0 %vm171_vm1, %v112_v16  ;;  %v2221_v33 = vld [vmem:[#allocation7 + $0xa4] ss:$16 sps:$4 sm:$0xff]   ;;  %v2223_v35 = vld [vmem:[#allocation7 + $0xa0] ss:$16 sps:$4 sm:$0xff]  }
  0x79   :  { %232 = vmatpush1.bf16.msra.mxu0 %v2192_v17  ;;  %263 = vmatprep.mubr.bf16.mxu0 %v2655_v0  ;;  %v2226_v36 = vld [vmem:[#allocation7 + $0x264] ss:$16 sps:$4 sm:$0xff]   ;;  %v2224_v38 = vld [vmem:[#allocation7 + $0x260] ss:$16 sps:$4 sm:$0xff]  }
  0x7a   :  { %233 = vmatprep.subr.bf16.mxu0 %v188_v19  ;;  %1075 = vmatpush1.bf16.msra.mxu1 %v2205_v23  ;;  %v2227_v37 = vld [vmem:[#allocation7 + $0xc4] ss:$16 sps:$4 sm:$0xff]   ;;  %v2229_v39 = vld [vmem:[#allocation7 + $0xc0] ss:$16 sps:$4 sm:$0xff]   ;;  %v121_v19 = vlaneseq }
  0x7b   :  { %1076 = vmatprep.subr.bf16.mxu1 %v2209_v25  ;;  %v2232_v40 = vld [vmem:[#allocation7 + $0x284] ss:$16 sps:$4 sm:$0xff]   ;;  %v2230_v42 = vld [vmem:[#allocation7 + $0x280] ss:$16 sps:$4 sm:$0xff]  }
  0x7c   :  { %v2233_v41 = vld [vmem:[#allocation7 + $0xe4] ss:$16 sps:$4 sm:$0xff]   ;;  %v2235_v43 = vld [vmem:[#allocation7 + $0xe0] ss:$16 sps:$4 sm:$0xff]   ;;  %v2781_v20 = vshrl.u32 %v121_v19, 7 }
  0x7d   :  { %234 = vmatpush1.bf16.msra.mxu0 %v185_v22  ;;  %v2238_v44 = vld [vmem:[#allocation7 + $0x2a4] ss:$16 sps:$4 sm:$0xff]   ;;  %v2236_v46 = vld [vmem:[#allocation7 + $0x2a0] ss:$16 sps:$4 sm:$0xff]   ;;  %v119_v22 = vld [vmem:[#allocation6] sm:$0xf] }
  0x7e   :  { %1111 = vmatprep.subr.bf16.mxu0 %v2208_v24  ;;  %1077 = vmatpush1.bf16.msra.mxu1 %v2211_v27  ;;  %v2239_v45 = vld [vmem:[#allocation7 + $0x104] ss:$16 sps:$4 sm:$0xff]   ;;  %v2241_v47 = vld [vmem:[#allocation7 + $0x100] ss:$16 sps:$4 sm:$0xff]   ;;  %v2784_v21 = vsub.s32 0, %v2781_v20  ;;  %v2787_v23 = vsub.s32 1, %v2781_v20 }
  0x7f   :  { %1078 = vmatprep.subr.bf16.mxu1 %v2215_v29  ;;  %v2244_v48 = vld [vmem:[#allocation7 + $0x2c4] ss:$16 sps:$4 sm:$0xff]   ;;  %v2242_v49 = vld [vmem:[#allocation7 + $0x2c0] ss:$16 sps:$4 sm:$0xff]   ;;  %v131_v29 = vsub.s32 2, %v2781_v20 }
  0x80   :  { %1926 = vmatmul.mubr.msk.bf16.vlgmr.msra.gmra.mrb[4].mxu0 %vm171_vm1, %v112_v16  ;;  %v2245_v50 = vld [vmem:[#allocation7 + $0x124] ss:$16 sps:$4 sm:$0xff]   ;;  %v2247_v51 = vld [vmem:[#allocation7 + $0x120] ss:$16 sps:$4 sm:$0xff]   ;;  %v124_v24 = vrot.slane %v119_v22, %v2784_v21  ;;  %v128_v25 = vrot.slane %v119_v22, %v2787_v23 }
  0x81   :  { %1112 = vmatpush1.bf16.msra.mxu0 %v2206_v26  ;;  %v2250_v52 = vld [vmem:[#allocation7 + $0x2e4] ss:$16 sps:$4 sm:$0xff]   ;;  %v2248_v54 = vld [vmem:[#allocation7 + $0x2e0] ss:$16 sps:$4 sm:$0xff]  }
  0x82   :  { %1113 = vmatprep.subr.bf16.mxu0 %v2214_v28  ;;  %1079 = vmatpush1.bf16.msra.mxu1 %v2217_v31  ;;  %v2251_v53 = vld [vmem:[#allocation7 + $0x144] ss:$16 sps:$4 sm:$0xff]   ;;  %v2253_v55 = vld [vmem:[#allocation7 + $0x140] ss:$16 sps:$4 sm:$0xff]  }
  0x83   :  { %1080 = vmatprep.subr.bf16.mxu1 %v2221_v33  ;;  %v2256_v56 = vld [vmem:[#allocation7 + $0x304] ss:$16 sps:$4 sm:$0xff]   ;;  %v2254_v58 = vld [vmem:[#allocation7 + $0x300] ss:$16 sps:$4 sm:$0xff]  }
  0x84   :  { %v2257_v57 = vld [vmem:[#allocation7 + $0x164] ss:$16 sps:$4 sm:$0xff]   ;;  %v2259_v59 = vld [vmem:[#allocation7 + $0x160] ss:$16 sps:$4 sm:$0xff]  }
  0x85   :  { %1114 = vmatpush1.bf16.msra.mxu0 %v2212_v30  ;;  %v2262_v60 = vld [vmem:[#allocation7 + $0x324] ss:$16 sps:$4 sm:$0xff]   ;;  %v2260_v62 = vld [vmem:[#allocation7 + $0x320] ss:$16 sps:$4 sm:$0xff]  }
  0x86   :  { %1115 = vmatprep.subr.bf16.mxu0 %v2220_v32  ;;  %1081 = vmatpush1.bf16.msra.mxu1 %v2223_v35  ;;  %v2263_v61 = vld [vmem:[#allocation7 + $0x184] ss:$16 sps:$4 sm:$0xff]   ;;  %v2265_v63 = vld [vmem:[#allocation7 + $0x180] ss:$16 sps:$4 sm:$0xff]   ;;  %v135_v32 = vsub.s32 3, %v2781_v20  ;;  %v2500_v20 = vld [vmem:[#allocation10 + $0x38] sm:$0xff]  }
  0x87   :  { %1082 = vmatprep.subr.bf16.mxu1 %v2227_v37  ;;  %v2268_v0 = vld [vmem:[#allocation7 + $0x344] ss:$16 sps:$4 sm:$0xff]   ;;  %v2266_v2 = vld [vmem:[#allocation7 + $0x340] ss:$16 sps:$4 sm:$0xff]  }
  0x88   :  { %v2269_v1 = vld [vmem:[#allocation7 + $0x1a4] ss:$16 sps:$4 sm:$0xff]   ;;  %v2271_v3 = vld [vmem:[#allocation7 + $0x1a0] ss:$16 sps:$4 sm:$0xff]  }
  0x89   :  { %1116 = vmatpush1.bf16.msra.mxu0 %v2218_v34  ;;  %v2274_v4 = vld [vmem:[#allocation7 + $0x364] ss:$16 sps:$4 sm:$0xff]   ;;  %v2272_v5 = vld [vmem:[#allocation7 + $0x360] ss:$16 sps:$4 sm:$0xff]  }
  0x8a   :  { %1117 = vmatprep.subr.bf16.mxu0 %v2226_v36  ;;  %1083 = vmatpush1.bf16.msra.mxu1 %v2229_v39  ;;  %v2275_v6 = vld [vmem:[#allocation7 + $0x1c4] ss:$16 sps:$4 sm:$0xff]   ;;  %v2277_v7 = vld [vmem:[#allocation7 + $0x1c0] ss:$16 sps:$4 sm:$0xff]   ;;  %v132_v36 = vrot.slane %v119_v22, %v131_v29  ;;  %v136_v39 = vrot.slane %v119_v22, %v135_v32  ;;  %v2320_v22 = vld [vmem:[#allocation7 + $0x128] ss:$16 sps:$4 sm:$0xff]  }
  0x8b   :  { %1084 = vmatprep.subr.bf16.mxu1 %v2233_v41  ;;  %v2280_v8 = vld [vmem:[#allocation7 + $0x384] ss:$16 sps:$4 sm:$0xff]   ;;  %v2278_v9 = vld [vmem:[#allocation7 + $0x380] ss:$16 sps:$4 sm:$0xff]   ;;  %v2295_v41 = vld [vmem:[#allocation7 + $0x2c] ss:$16 sps:$4 sm:$0xff]  }
  0x8c   :  { %v2281_v10 = vld [vmem:[#allocation7 + $0x1e4] ss:$16 sps:$4 sm:$0xff]   ;;  %v2283_v11 = vld [vmem:[#allocation7 + $0x1e0] ss:$16 sps:$4 sm:$0xff]  }
  0x8d   :  { %1118 = vmatpush1.bf16.msra.mxu0 %v2224_v38  ;;  %v2286_v12 = vld [vmem:[#allocation7 + $0x3a4] ss:$16 sps:$4 sm:$0xff]   ;;  %v2284_v13 = vld [vmem:[#allocation7 + $0x3a0] ss:$16 sps:$4 sm:$0xff]   ;;  %v2287_v38 = vld [vmem:[#allocation7 + $0x8] ss:$16 sps:$4 sm:$0xff]  }
  0x8e   :  { %1119 = vmatprep.subr.bf16.mxu0 %v2232_v40  ;;  %1085 = vmatpush1.bf16.msra.mxu1 %v2235_v43  ;;  %v2292_v15 = vld [vmem:[#allocation7 + $0x3c4] ss:$16 sps:$4 sm:$0xff]   ;;  %v2290_v16 = vld [vmem:[#allocation7 + $0x3c0] ss:$16 sps:$4 sm:$0xff]  }
  0x8f   :  { %1086 = vmatprep.subr.bf16.mxu1 %v2239_v45  ;;  %v2298_v17 = vld [vmem:[#allocation7 + $0x3e4] ss:$16 sps:$4 sm:$0xff]   ;;  %v2296_v18 = vld [vmem:[#allocation7 + $0x3e0] ss:$16 sps:$4 sm:$0xff]  }
  0x90   :  { %v2391_v45 = vld [vmem:[#allocation9 + $0x4] ss:$8 sps:$4 sm:$0xff]  }
  0x91   :  { %1120 = vmatpush1.bf16.msra.mxu0 %v2230_v42 }
  0x92   :  { %1121 = vmatprep.subr.bf16.mxu0 %v2238_v44  ;;  %1087 = vmatpush1.bf16.msra.mxu1 %v2241_v47  ;;  %v2293_v47 = vld [vmem:[#allocation7 + $0x28] ss:$16 sps:$4 sm:$0xff]  }
  0x93   :  { %1088 = vmatprep.subr.bf16.mxu1 %v2245_v50  ;;  %v2301_v50 = vld [vmem:[#allocation7 + $0x4c] ss:$16 sps:$4 sm:$0xff]  }
  0x95   :  { %1122 = vmatpush1.bf16.msra.mxu0 %v2236_v46 }
  0x96   :  { %1123 = vmatprep.subr.bf16.mxu0 %v2244_v48  ;;  %1089 = vmatpush1.bf16.msra.mxu1 %v2247_v51 }
  0x97   :  { %1090 = vmatprep.subr.bf16.mxu1 %v2251_v53 }
  0x99   :  { %1124 = vmatpush1.bf16.msra.mxu0 %v2242_v49 }
  0x9a   :  { %1125 = vmatprep.subr.bf16.mxu0 %v2250_v52  ;;  %1091 = vmatpush1.bf16.msra.mxu1 %v2253_v55  ;;  %v2299_v55 = vld [vmem:[#allocation7 + $0x48] ss:$16 sps:$4 sm:$0xff]  }
  0x9b   :  { %1092 = vmatprep.subr.bf16.mxu1 %v2257_v57  ;;  %v2304_v57 = vld [vmem:[#allocation7 + $0x6c] ss:$16 sps:$4 sm:$0xff]  }
  0x9d   :  { %1126 = vmatpush1.bf16.msra.mxu0 %v2248_v54 }
  0x9e   :  { %1127 = vmatprep.subr.bf16.mxu0 %v2256_v56  ;;  %1093 = vmatpush1.bf16.msra.mxu1 %v2259_v59  ;;  %v2389_v56 = vld [vmem:[#allocation9] ss:$8 sps:$4 sm:$0xff]  }
  0x9f   :  { %1094 = vmatprep.subr.bf16.mxu1 %v2263_v61  ;;  %v2302_v59 = vld [vmem:[#allocation7 + $0x68] ss:$16 sps:$4 sm:$0xff]   ;;  %v2307_v61 = vld [vmem:[#allocation7 + $0x8c] ss:$16 sps:$4 sm:$0xff]  }
  0xa1   :  { %1128 = vmatpush1.bf16.msra.mxu0 %v2254_v58  ;;  %v2394_v58 = vld [vmem:[#allocation9 + $0x14] ss:$8 sps:$4 sm:$0xff]  }
  0xa2   :  { %1129 = vmatprep.subr.bf16.mxu0 %v2262_v60  ;;  %1095 = vmatpush1.bf16.msra.mxu1 %v2265_v63  ;;  %v2392_v60 = vld [vmem:[#allocation9 + $0x10] ss:$8 sps:$4 sm:$0xff]  }
  0xa3   :  { %1096 = vmatprep.subr.bf16.mxu1 %v2269_v1  ;;  %v2305_v63 = vld [vmem:[#allocation7 + $0x88] ss:$16 sps:$4 sm:$0xff]   ;;  %v2310_v1 = vld [vmem:[#allocation7 + $0xac] ss:$16 sps:$4 sm:$0xff]  }
  0xa5   :  { %1130 = vmatpush1.bf16.msra.mxu0 %v2260_v62  ;;  %v2397_v62 = vld [vmem:[#allocation9 + $0x24] ss:$8 sps:$4 sm:$0xff]  }
  0xa6   :  { %1131 = vmatprep.subr.bf16.mxu0 %v2268_v0  ;;  %1097 = vmatpush1.bf16.msra.mxu1 %v2271_v3  ;;  %v2395_v0 = vld [vmem:[#allocation9 + $0x20] ss:$8 sps:$4 sm:$0xff]  }
  0xa7   :  { %1098 = vmatprep.subr.bf16.mxu1 %v2275_v6  ;;  %v2308_v3 = vld [vmem:[#allocation7 + $0xa8] ss:$16 sps:$4 sm:$0xff]   ;;  %v2403_v6 = vld [vmem:[#allocation9 + $0x44] ss:$8 sps:$4 sm:$0xff]  }
  0xa9   :  { %1132 = vmatpush1.bf16.msra.mxu0 %v2266_v2  ;;  %v2400_v2 = vld [vmem:[#allocation9 + $0x34] ss:$8 sps:$4 sm:$0xff]  }
  0xaa   :  { %1133 = vmatprep.subr.bf16.mxu0 %v2274_v4  ;;  %1099 = vmatpush1.bf16.msra.mxu1 %v2277_v7  ;;  %v2398_v4 = vld [vmem:[#allocation9 + $0x30] ss:$8 sps:$4 sm:$0xff]  }
  0xab   :  { %1100 = vmatprep.subr.bf16.mxu1 %v2281_v10  ;;  %v2311_v7 = vld [vmem:[#allocation7 + $0xc8] ss:$16 sps:$4 sm:$0xff]   ;;  %v2406_v10 = vld [vmem:[#allocation9 + $0x54] ss:$8 sps:$4 sm:$0xff]  }
  0xad   :  { %1134 = vmatpush1.bf16.msra.mxu0 %v2272_v5  ;;  %v2313_v5 = vld [vmem:[#allocation7 + $0xcc] ss:$16 sps:$4 sm:$0xff]  }
  0xae   :  { %1135 = vmatprep.subr.bf16.mxu0 %v2280_v8  ;;  %1101 = vmatpush1.bf16.msra.mxu1 %v2283_v11  ;;  %v2401_v8 = vld [vmem:[#allocation9 + $0x40] ss:$8 sps:$4 sm:$0xff]  }
  0xaf   :  { %1152 = vmatprep.subr.bf16.mxu1 %v2289_v14  ;;  %v2314_v11 = vld [vmem:[#allocation7 + $0xe8] ss:$16 sps:$4 sm:$0xff]   ;;  %v2409_v14 = vld [vmem:[#allocation9 + $0x64] ss:$8 sps:$4 sm:$0xff]  }
  0xb1   :  { %1136 = vmatpush1.bf16.msra.mxu0 %v2278_v9  ;;  %v2316_v9 = vld [vmem:[#allocation7 + $0xec] ss:$16 sps:$4 sm:$0xff]  }
  0xb2   :  { %1137 = vmatprep.subr.bf16.mxu0 %v2286_v12  ;;  %v2404_v12 = vld [vmem:[#allocation9 + $0x50] ss:$8 sps:$4 sm:$0xff]  }
  0xb5   :  { %1138 = vmatpush1.bf16.msra.mxu0 %v2284_v13  ;;  %v2319_v13 = vld [vmem:[#allocation7 + $0x10c] ss:$16 sps:$4 sm:$0xff]  }
  0xb6   :  { %1139 = vmatprep.subr.bf16.mxu0 %v2292_v15  ;;  %v2317_v15 = vld [vmem:[#allocation7 + $0x108] ss:$16 sps:$4 sm:$0xff]  }
  0xb9   :  { %1140 = vmatpush1.bf16.msra.mxu0 %v2290_v16  ;;  %v2407_v16 = vld [vmem:[#allocation9 + $0x60] ss:$8 sps:$4 sm:$0xff]  }
  0xba   :  { %1141 = vmatprep.subr.bf16.mxu0 %v2298_v17  ;;  %v2322_v17 = vld [vmem:[#allocation7 + $0x12c] ss:$16 sps:$4 sm:$0xff]  }
  0xbd   :  { %1142 = vmatpush1.bf16.msra.mxu0 %v2296_v18  ;;  %v2412_v18 = vld [vmem:[#allocation9 + $0x74] ss:$8 sps:$4 sm:$0xff]  }
  0xbe   :  { %1638 = vmatprep.subr.bf16.mxu0 %v2391_v45  ;;  %v2335_v45 = vld [vmem:[#allocation7 + $0x1c8] ss:$16 sps:$4 sm:$0xff]  }
 0x14b   :  { %v224_v26 = vpop.f32.mrb[0].mxu0 }
 0x14c   :  { %v225_v27 = vadd.f32 %v224_v26, %v124_v24  ;;  %v226_v28 = vpop.f32.mrb[1].mxu0  ;;  %v2410_v24 = vld [vmem:[#allocation9 + $0x70] ss:$8 sps:$4 sm:$0xff]   ;;  %v2415_v26 = vld [vmem:[#allocation9 + $0x84] ss:$8 sps:$4 sm:$0xff]  }
 0x14d   :  { %v227_v30 = vadd.f32 %v226_v28, %v128_v25  ;;  %v228_v31 = vpop.f32.mrb[2].mxu0  ;;  %v2325_v25 = vld [vmem:[#allocation7 + $0x14c] ss:$16 sps:$4 sm:$0xff]   ;;  %v2413_v28 = vld [vmem:[#allocation9 + $0x80] ss:$8 sps:$4 sm:$0xff]  }
 0x14e   :  { %v272_v33 = vmax.f32 %v225_v27, 0.0  ;;  %v229_v34 = vpop.f32.mrb[3].mxu0  ;;  %v2323_v27 = vld [vmem:[#allocation7 + $0x148] ss:$16 sps:$4 sm:$0xff]   ;;  %v2418_v31 = vld [vmem:[#allocation9 + $0x94] ss:$8 sps:$4 sm:$0xff]  }
 0x14f   :  { %v273_v35 = vmax.f32 %v227_v30, 0.0  ;;  %v2328_v30 = vld [vmem:[#allocation7 + $0x16c] ss:$16 sps:$4 sm:$0xff]   ;;  %v2416_v34 = vld [vmem:[#allocation9 + $0x90] ss:$8 sps:$4 sm:$0xff]  }
 0x150   :  { %v2797_v40 = vpack.c.bf16 %v272_v33, %v272_v33  ;;  %v2326_v33 = vld [vmem:[#allocation7 + $0x168] ss:$16 sps:$4 sm:$0xff]  }
 0x151   :  { %v277_v37 = vpack.c.bf16 %v273_v35, %v273_v35  ;;  %v2331_v35 = vld [vmem:[#allocation7 + $0x18c] ss:$16 sps:$4 sm:$0xff]  }
 0x153   :  { %v265_v42 = vpop.f32.mrb[4].mxu0  ;;  %1102 = vmatprep.mubr.bf16.mxu1 %v277_v37 }
 0x154   :  { %v266_v43 = vadd.f32 %v265_v42, %v132_v36  ;;  %v267_v44 = vpop.f32.mrb[5].mxu0  ;;  %1103 = vmatmul.mubr.bf16.vlgmr.msra.gmra.mrb[0].mxu1 %v2797_v40  ;;  %v2421_v36 = vld [vmem:[#allocation9 + $0xa4] ss:$8 sps:$4 sm:$0xff]   ;;  %v2332_v42 = vld [vmem:[#allocation7 + $0x1a8] ss:$16 sps:$4 sm:$0xff]  }
 0x155   :  { %v268_v46 = vadd.f32 %v267_v44, %v136_v39  ;;  %1153 = vmatpush1.bf16.msra.mxu1 %v2287_v38  ;;  %1184 = vmatprep.mubr.bf16.mxu1 %v277_v37  ;;  %v269_v48 = vpop.f32.mrb[6].mxu0  ;;  %v2329_v37 = vld [vmem:[#allocation7 + $0x188] ss:$16 sps:$4 sm:$0xff]   ;;  %v2334_v39 = vld [vmem:[#allocation7 + $0x1ac] ss:$16 sps:$4 sm:$0xff]  }
 0x156   :  { %v274_v49 = vmax.f32 %v266_v43, 0.0  ;;  %1154 = vmatprep.subr.bf16.mxu1 %v2295_v41  ;;  %v270_v51 = vpop.f32.mrb[7].mxu0  ;;  %v2419_v38 = vld [vmem:[#allocation9 + $0xa0] ss:$8 sps:$4 sm:$0xff]   ;;  %v2424_v41 = vld [vmem:[#allocation9 + $0xb4] ss:$8 sps:$4 sm:$0xff]  }
 0x157   :  { %v275_v52 = vmax.f32 %v268_v46, 0.0  ;;  %v2422_v43 = vld [vmem:[#allocation9 + $0xb0] ss:$8 sps:$4 sm:$0xff]   ;;  %v2337_v44 = vld [vmem:[#allocation7 + $0x1cc] ss:$16 sps:$4 sm:$0xff]  }
 0x158   :  { %v2800_v53 = vpack.c.bf16 %v274_v49, %v274_v49  ;;  %v2340_v46 = vld [vmem:[#allocation7 + $0x1ec] ss:$16 sps:$4 sm:$0xff]   ;;  %v2341_v49 = vld [vmem:[#allocation7 + $0x208] ss:$16 sps:$4 sm:$0xff]  }
 0x159   :  { %v2802_v54 = vpack.c.bf16 %v275_v52, %v275_v52  ;;  %1155 = vmatpush1.bf16.msra.mxu1 %v2293_v47  ;;  %v2338_v47 = vld [vmem:[#allocation7 + $0x1e8] ss:$16 sps:$4 sm:$0xff]   ;;  %v2343_v48 = vld [vmem:[#allocation7 + $0x20c] ss:$16 sps:$4 sm:$0xff]  }
 0x15a   :  { %1156 = vmatprep.subr.bf16.mxu1 %v2301_v50  ;;  %v2346_v50 = vld [vmem:[#allocation7 + $0x22c] ss:$16 sps:$4 sm:$0xff]   ;;  %v2344_v51 = vld [vmem:[#allocation7 + $0x228] ss:$16 sps:$4 sm:$0xff]  }
 0x15b   :  { %1143 = vmatprep.mubr.bf16.mxu0 %v2802_v54  ;;  %v2349_v52 = vld [vmem:[#allocation7 + $0x24c] ss:$16 sps:$4 sm:$0xff]  }
 0x15c   :  { %1144 = vmatmul.mubr.bf16.vlgmr.msra.gmra.mrb[8].mxu0 %v2800_v53 }
 0x15d   :  { %1157 = vmatpush1.bf16.msra.mxu1 %v2299_v55  ;;  %1639 = vmatpush1.bf16.msra.mxu0 %v2389_v56  ;;  %v2347_v55 = vld [vmem:[#allocation7 + $0x248] ss:$16 sps:$4 sm:$0xff]   ;;  %v2352_v56 = vld [vmem:[#allocation7 + $0x26c] ss:$16 sps:$4 sm:$0xff]  }
 0x15e   :  { %1158 = vmatprep.subr.bf16.mxu1 %v2304_v57  ;;  %1640 = vmatprep.subr.bf16.mxu0 %v2394_v58  ;;  %v2350_v57 = vld [vmem:[#allocation7 + $0x268] ss:$16 sps:$4 sm:$0xff]   ;;  %v2355_v58 = vld [vmem:[#allocation7 + $0x28c] ss:$16 sps:$4 sm:$0xff]  }
 0x161   :  { %1159 = vmatpush1.bf16.msra.mxu1 %v2302_v59  ;;  %1641 = vmatpush1.bf16.msra.mxu0 %v2392_v60  ;;  %v2353_v59 = vld [vmem:[#allocation7 + $0x288] ss:$16 sps:$4 sm:$0xff]   ;;  %v2358_v60 = vld [vmem:[#allocation7 + $0x2ac] ss:$16 sps:$4 sm:$0xff]  }
 0x162   :  { %1160 = vmatprep.subr.bf16.mxu1 %v2307_v61  ;;  %1642 = vmatprep.subr.bf16.mxu0 %v2397_v62  ;;  %v2361_v61 = vld [vmem:[#allocation7 + $0x2cc] ss:$16 sps:$4 sm:$0xff]   ;;  %v2425_v62 = vld [vmem:[#allocation9 + $0xc0] ss:$8 sps:$4 sm:$0xff]  }
 0x165   :  { %1161 = vmatpush1.bf16.msra.mxu1 %v2305_v63  ;;  %1643 = vmatpush1.bf16.msra.mxu0 %v2395_v0  ;;  %v2359_v63 = vld [vmem:[#allocation7 + $0x2c8] ss:$16 sps:$4 sm:$0xff]   ;;  %v2364_v0 = vld [vmem:[#allocation7 + $0x2ec] ss:$16 sps:$4 sm:$0xff]  }
 0x166   :  { %1162 = vmatprep.subr.bf16.mxu1 %v2310_v1  ;;  %1644 = vmatprep.subr.bf16.mxu0 %v2400_v2  ;;  %v2428_v1 = vld [vmem:[#allocation9 + $0xd0] ss:$8 sps:$4 sm:$0xff]   ;;  %v2430_v2 = vld [vmem:[#allocation9 + $0xd4] ss:$8 sps:$4 sm:$0xff]  }
 0x169   :  { %1163 = vmatpush1.bf16.msra.mxu1 %v2308_v3  ;;  %1645 = vmatpush1.bf16.msra.mxu0 %v2398_v4  ;;  %v2362_v3 = vld [vmem:[#allocation7 + $0x2e8] ss:$16 sps:$4 sm:$0xff]   ;;  %v2367_v4 = vld [vmem:[#allocation7 + $0x30c] ss:$16 sps:$4 sm:$0xff]  }
 0x16a   :  { %1164 = vmatprep.subr.bf16.mxu1 %v2313_v5  ;;  %1646 = vmatprep.subr.bf16.mxu0 %v2403_v6  ;;  %v2433_v5 = vld [vmem:[#allocation9 + $0xe4] ss:$8 sps:$4 sm:$0xff]   ;;  %v2431_v6 = vld [vmem:[#allocation9 + $0xe0] ss:$8 sps:$4 sm:$0xff]  }
 0x16d   :  { %1165 = vmatpush1.bf16.msra.mxu1 %v2311_v7  ;;  %1647 = vmatpush1.bf16.msra.mxu0 %v2401_v8  ;;  %v2365_v7 = vld [vmem:[#allocation7 + $0x308] ss:$16 sps:$4 sm:$0xff]   ;;  %v2370_v8 = vld [vmem:[#allocation7 + $0x32c] ss:$16 sps:$4 sm:$0xff]  }
 0x16e   :  { %1166 = vmatprep.subr.bf16.mxu1 %v2316_v9  ;;  %1648 = vmatprep.subr.bf16.mxu0 %v2406_v10  ;;  %v2436_v9 = vld [vmem:[#allocation9 + $0xf4] ss:$8 sps:$4 sm:$0xff]   ;;  %v2434_v10 = vld [vmem:[#allocation9 + $0xf0] ss:$8 sps:$4 sm:$0xff]  }
 0x171   :  { %1167 = vmatpush1.bf16.msra.mxu1 %v2314_v11  ;;  %1649 = vmatpush1.bf16.msra.mxu0 %v2404_v12  ;;  %v2368_v11 = vld [vmem:[#allocation7 + $0x328] ss:$16 sps:$4 sm:$0xff]   ;;  %v2373_v12 = vld [vmem:[#allocation7 + $0x34c] ss:$16 sps:$4 sm:$0xff]  }
 0x172   :  { %1168 = vmatprep.subr.bf16.mxu1 %v2319_v13  ;;  %1650 = vmatprep.subr.bf16.mxu0 %v2409_v14  ;;  %v2439_v13 = vld [vmem:[#allocation9 + $0x104] ss:$8 sps:$4 sm:$0xff]   ;;  %v2371_v14 = vld [vmem:[#allocation7 + $0x348] ss:$16 sps:$4 sm:$0xff]  }
 0x175   :  { %1169 = vmatpush1.bf16.msra.mxu1 %v2317_v15  ;;  %1651 = vmatpush1.bf16.msra.mxu0 %v2407_v16  ;;  %v2376_v15 = vld [vmem:[#allocation7 + $0x36c] ss:$16 sps:$4 sm:$0xff]   ;;  %v2374_v16 = vld [vmem:[#allocation7 + $0x368] ss:$16 sps:$4 sm:$0xff]  }
 0x176   :  { %1170 = vmatprep.subr.bf16.mxu1 %v2322_v17  ;;  %1652 = vmatprep.subr.bf16.mxu0 %v2412_v18  ;;  %v2379_v17 = vld [vmem:[#allocation7 + $0x38c] ss:$16 sps:$4 sm:$0xff]   ;;  %v2377_v18 = vld [vmem:[#allocation7 + $0x388] ss:$16 sps:$4 sm:$0xff]  }
 0x179   :  { %1171 = vmatpush1.bf16.msra.mxu1 %v2320_v22  ;;  %1653 = vmatpush1.bf16.msra.mxu0 %v2410_v24  ;;  %v2382_v22 = vld [vmem:[#allocation7 + $0x3ac] ss:$16 sps:$4 sm:$0xff]   ;;  %v2380_v24 = vld [vmem:[#allocation7 + $0x3a8] ss:$16 sps:$4 sm:$0xff]  }
 0x17a   :  { %1172 = vmatprep.subr.bf16.mxu1 %v2325_v25  ;;  %1654 = vmatprep.subr.bf16.mxu0 %v2415_v26  ;;  %v2385_v25 = vld [vmem:[#allocation7 + $0x3cc] ss:$16 sps:$4 sm:$0xff]   ;;  %v2383_v26 = vld [vmem:[#allocation7 + $0x3c8] ss:$16 sps:$4 sm:$0xff]  }
 0x17d   :  { %1173 = vmatpush1.bf16.msra.mxu1 %v2323_v27  ;;  %1655 = vmatpush1.bf16.msra.mxu0 %v2413_v28  ;;  %v2388_v27 = vld [vmem:[#allocation7 + $0x3ec] ss:$16 sps:$4 sm:$0xff]   ;;  %v2386_v28 = vld [vmem:[#allocation7 + $0x3e8] ss:$16 sps:$4 sm:$0xff]  }
 0x17e   :  { %1174 = vmatprep.subr.bf16.mxu1 %v2328_v30  ;;  %1656 = vmatprep.subr.bf16.mxu0 %v2418_v31  ;;  %v2812_v30 = vld [vmem:[%s2840_s4] sm:$0xf] }
 0x181   :  { %1175 = vmatpush1.bf16.msra.mxu1 %v2326_v33  ;;  %1657 = vmatpush1.bf16.msra.mxu0 %v2416_v34 }
 0x182   :  { %1176 = vmatprep.subr.bf16.mxu1 %v2331_v35  ;;  %1658 = vmatprep.subr.bf16.mxu0 %v2421_v36  ;;  %v413_v35 = vrot.slane %v2812_v30, %v2784_v21 }
 0x185   :  { %1177 = vmatpush1.bf16.msra.mxu1 %v2329_v37  ;;  %1659 = vmatpush1.bf16.msra.mxu0 %v2419_v38  ;;  %v417_v37 = vrot.slane %v2812_v30, %v2787_v23 }
 0x186   :  { %1178 = vmatprep.subr.bf16.mxu1 %v2334_v39  ;;  %1660 = vmatprep.subr.bf16.mxu0 %v2424_v41 }
 0x189   :  { %1179 = vmatpush1.bf16.msra.mxu1 %v2332_v42  ;;  %1661 = vmatpush1.bf16.msra.mxu0 %v2422_v43  ;;  %v2485_v43 = vld [vmem:[#allocation10 + $0x40] sm:$0xff]  }
 0x18a   :  { %1180 = vmatprep.subr.bf16.mxu1 %v2337_v44  ;;  %v2486_v44 = vld [vmem:[#allocation10] sm:$0xff]  }
 0x18d   :  { %1181 = vmatpush1.bf16.msra.mxu1 %v2335_v45  ;;  %v2487_v45 = vld [vmem:[#allocation10 + $0x48] sm:$0xff]  }
 0x18e   :  { %1182 = vmatprep.subr.bf16.mxu1 %v2340_v46 }
 0x191   :  { %1183 = vmatpush1.bf16.msra.mxu1 %v2338_v47 }
 0x192   :  { %1193 = vmatprep.subr.bf16.mxu1 %v2343_v48 }
 0x194   :  { %1185 = vmatmul.mubr.bf16.vlgmr.msra.gmra.mrb[4].mxu1 %v2797_v40  ;;  %v2356_v40 = vld [vmem:[#allocation7 + $0x2a8] ss:$16 sps:$4 sm:$0xff]  }
 0x195   :  { %1194 = vmatpush1.bf16.msra.mxu1 %v2341_v49  ;;  %1225 = vmatprep.mubr.bf16.mxu1 %v2802_v54  ;;  %v2427_v54 = vld [vmem:[#allocation9 + $0xc4] ss:$8 sps:$4 sm:$0xff]  }
 0x196   :  { %1195 = vmatprep.subr.bf16.mxu1 %v2346_v50  ;;  %1662 = vmatprep.subr.bf16.mxu0 %v2427_v54  ;;  %v2492_v54 = vld [vmem:[#allocation10 + $0x18] sm:$0xff]  }
 0x197   :  { %1663 = vmatpush1.bf16.msra.mxu0 %v2425_v62  ;;  %v2493_v62 = vld [vmem:[#allocation10 + $0x60] sm:$0xff]  }
 0x198   :  { %1664 = vmatprep.subr.bf16.mxu0 %v2430_v2  ;;  %v2495_v2 = vld [vmem:[#allocation10 + $0x68] sm:$0xff]  }
 0x199   :  { %1196 = vmatpush1.bf16.msra.mxu1 %v2344_v51  ;;  %v2488_v51 = vld [vmem:[#allocation10 + $0x8] sm:$0xff]  }
 0x19a   :  { %1197 = vmatprep.subr.bf16.mxu1 %v2349_v52  ;;  %v2489_v52 = vld [vmem:[#allocation10 + $0x50] sm:$0xff]  }
 0x19b   :  { %1665 = vmatpush1.bf16.msra.mxu0 %v2428_v1  ;;  %v2494_v1 = vld [vmem:[#allocation10 + $0x20] sm:$0xff]  }
 0x19c   :  { %1666 = vmatprep.subr.bf16.mxu0 %v2433_v5  ;;  %v2496_v5 = vld [vmem:[#allocation10 + $0x28] sm:$0xff]  }
 0x19d   :  { %1198 = vmatpush1.bf16.msra.mxu1 %v2347_v55 }
 0x19e   :  { %1199 = vmatprep.subr.bf16.mxu1 %v2352_v56  ;;  %v2437_v56 = vld [vmem:[#allocation9 + $0x100] ss:$8 sps:$4 sm:$0xff]  }
 0x19f   :  { %1667 = vmatpush1.bf16.msra.mxu0 %v2431_v6  ;;  %v2449_v6 = vld [vmem:[#allocation9 + $0x140] ss:$8 sps:$4 sm:$0xff]  }
 0x1a0   :  { %1668 = vmatprep.subr.bf16.mxu0 %v2436_v9  ;;  %v2457_v9 = vld [vmem:[#allocation9 + $0x164] ss:$8 sps:$4 sm:$0xff]  }
 0x1a1   :  { %1200 = vmatpush1.bf16.msra.mxu1 %v2350_v57 }
 0x1a2   :  { %1201 = vmatprep.subr.bf16.mxu1 %v2355_v58  ;;  %v2442_v58 = vld [vmem:[#allocation9 + $0x114] ss:$8 sps:$4 sm:$0xff]  }
 0x1a3   :  { %1669 = vmatpush1.bf16.msra.mxu0 %v2434_v10  ;;  %v2455_v10 = vld [vmem:[#allocation9 + $0x160] ss:$8 sps:$4 sm:$0xff]  }
 0x1a4   :  { %1679 = vmatprep.subr.bf16.mxu0 %v2439_v13  ;;  %v2463_v13 = vld [vmem:[#allocation9 + $0x184] ss:$8 sps:$4 sm:$0xff]  }
 0x1a5   :  { %1202 = vmatpush1.bf16.msra.mxu1 %v2353_v59  ;;  %v2490_v59 = vld [vmem:[#allocation10 + $0x10] sm:$0xff]  }
 0x1a6   :  { %1203 = vmatprep.subr.bf16.mxu1 %v2358_v60  ;;  %v2491_v60 = vld [vmem:[#allocation10 + $0x58] sm:$0xff]  }
 0x1a9   :  { %1204 = vmatpush1.bf16.msra.mxu1 %v2356_v40  ;;  %v2440_v40 = vld [vmem:[#allocation9 + $0x110] ss:$8 sps:$4 sm:$0xff]  }
 0x1aa   :  { %1205 = vmatprep.subr.bf16.mxu1 %v2361_v61  ;;  %v2445_v61 = vld [vmem:[#allocation9 + $0x124] ss:$8 sps:$4 sm:$0xff]  }
 0x1ad   :  { %1206 = vmatpush1.bf16.msra.mxu1 %v2359_v63  ;;  %v2443_v63 = vld [vmem:[#allocation9 + $0x120] ss:$8 sps:$4 sm:$0xff]  }
 0x1ae   :  { %1207 = vmatprep.subr.bf16.mxu1 %v2364_v0  ;;  %v2448_v0 = vld [vmem:[#allocation9 + $0x134] ss:$8 sps:$4 sm:$0xff]  }
 0x1b1   :  { %1208 = vmatpush1.bf16.msra.mxu1 %v2362_v3  ;;  %v2446_v3 = vld [vmem:[#allocation9 + $0x130] ss:$8 sps:$4 sm:$0xff]  }
 0x1b2   :  { %1209 = vmatprep.subr.bf16.mxu1 %v2367_v4  ;;  %v2451_v4 = vld [vmem:[#allocation9 + $0x144] ss:$8 sps:$4 sm:$0xff]  }
 0x1b5   :  { %1210 = vmatpush1.bf16.msra.mxu1 %v2365_v7  ;;  %v2454_v7 = vld [vmem:[#allocation9 + $0x154] ss:$8 sps:$4 sm:$0xff]  }
 0x1b6   :  { %1211 = vmatprep.subr.bf16.mxu1 %v2370_v8  ;;  %v2452_v8 = vld [vmem:[#allocation9 + $0x150] ss:$8 sps:$4 sm:$0xff]  }
 0x1b9   :  { %1212 = vmatpush1.bf16.msra.mxu1 %v2368_v11  ;;  %v2460_v11 = vld [vmem:[#allocation9 + $0x174] ss:$8 sps:$4 sm:$0xff]  }
 0x1ba   :  { %1213 = vmatprep.subr.bf16.mxu1 %v2373_v12  ;;  %v2458_v12 = vld [vmem:[#allocation9 + $0x170] ss:$8 sps:$4 sm:$0xff]  }
 0x1bd   :  { %1214 = vmatpush1.bf16.msra.mxu1 %v2371_v14  ;;  %v2461_v14 = vld [vmem:[#allocation9 + $0x180] ss:$8 sps:$4 sm:$0xff]  }
 0x1be   :  { %1215 = vmatprep.subr.bf16.mxu1 %v2376_v15  ;;  %v2466_v15 = vld [vmem:[#allocation9 + $0x194] ss:$8 sps:$4 sm:$0xff]  }
 0x1c1   :  { %1216 = vmatpush1.bf16.msra.mxu1 %v2374_v16  ;;  %v2464_v16 = vld [vmem:[#allocation9 + $0x190] ss:$8 sps:$4 sm:$0xff]  }
 0x1c2   :  { %1217 = vmatprep.subr.bf16.mxu1 %v2379_v17  ;;  %v2469_v17 = vld [vmem:[#allocation9 + $0x1a4] ss:$8 sps:$4 sm:$0xff]  }
 0x1c5   :  { %1218 = vmatpush1.bf16.msra.mxu1 %v2377_v18  ;;  %v2467_v18 = vld [vmem:[#allocation9 + $0x1a0] ss:$8 sps:$4 sm:$0xff]  }
 0x1c6   :  { %1219 = vmatprep.subr.bf16.mxu1 %v2382_v22  ;;  %v2472_v22 = vld [vmem:[#allocation9 + $0x1b4] ss:$8 sps:$4 sm:$0xff]  }
 0x1c9   :  { %1220 = vmatpush1.bf16.msra.mxu1 %v2380_v24  ;;  %v2470_v24 = vld [vmem:[#allocation9 + $0x1b0] ss:$8 sps:$4 sm:$0xff]  }
 0x1ca   :  { %1221 = vmatprep.subr.bf16.mxu1 %v2385_v25  ;;  %v2475_v25 = vld [vmem:[#allocation9 + $0x1c4] ss:$8 sps:$4 sm:$0xff]  }
 0x1cd   :  { %1222 = vmatpush1.bf16.msra.mxu1 %v2383_v26  ;;  %v2473_v26 = vld [vmem:[#allocation9 + $0x1c0] ss:$8 sps:$4 sm:$0xff]  }
 0x1ce   :  { %1223 = vmatprep.subr.bf16.mxu1 %v2388_v27  ;;  %v2478_v27 = vld [vmem:[#allocation9 + $0x1d4] ss:$8 sps:$4 sm:$0xff]  }
 0x1d1   :  { %1224 = vmatpush1.bf16.msra.mxu1 %v2386_v28  ;;  %v2476_v28 = vld [vmem:[#allocation9 + $0x1d0] ss:$8 sps:$4 sm:$0xff]  }
 0x1d2   :  { %2136 = vmatprep.subr.bf16.mxu1 %v2485_v43 }
 0x1d4   :  { %1226 = vmatmul.mubr.bf16.vlgmr.msra.gmra.mrb[4].mxu1 %v2800_v53 }
 0x1d5   :  { %2137 = vmatpush3.bf16.msra.mxu1 %v2486_v44 }
 0x1d6   :  { %2138 = vmatprep.subr.bf16.mxu1 %v2487_v45 }
 0x1d9   :  { %2139 = vmatpush3.bf16.msra.mxu1 %v2488_v51 }
 0x1da   :  { %2140 = vmatprep.subr.bf16.mxu1 %v2489_v52 }
 0x1dd   :  { %2141 = vmatpush3.bf16.msra.mxu1 %v2490_v59 }
 0x1de   :  { %2142 = vmatprep.subr.bf16.mxu1 %v2491_v60 }
 0x1e1   :  { %2143 = vmatpush3.bf16.msra.mxu1 %v2492_v54 }
 0x1e2   :  { %2144 = vmatprep.subr.bf16.mxu1 %v2493_v62  ;;  %v2119_v62 = vld [vmem:[%s2844_s8] ss:$0 sm:$0xff] }
 0x1e5   :  { %2145 = vmatpush3.bf16.msra.mxu1 %v2494_v1 }
 0x1e6   :  { %2146 = vmatprep.subr.bf16.mxu1 %v2495_v2  ;;  %v1900_v2 = vand.u32 127, %v121_v19 }
 0x1e8   :  { %vm1901_vm2 = vcmp.ge.s32.totalorder %v1900_v2, 35  ;;  %vm1902_vm3 = vcmp.lt.s32.totalorder %v1900_v2, 65 }
 0x1e9   :  { %2147 = vmatpush3.bf16.msra.mxu1 %v2496_v5  ;;  %vm1903_vm4 = vmand %vm1901_vm2, %vm1902_vm3 }
 0x227   :  { %v1104_v31 = vpop.f32.mrb[0].mxu1 }
 0x228   :  { %v1106_v33 = vpop.f32.mrb[1].mxu1  ;;  %v1105_v38 = vadd.f32 %v1104_v31, %v413_v35  ;;  %v2481_v31 = vld [vmem:[#allocation9 + $0x1e4] ss:$8 sps:$4 sm:$0xff]   ;;  %v2482_v35 = vld [vmem:[#allocation9 + $0x1f0] ss:$8 sps:$4 sm:$0xff]  }
 0x229   :  { %v1108_v34 = vpop.f32.mrb[2].mxu1  ;;  %v1107_v39 = vadd.f32 %v1106_v33, %v417_v37  ;;  %v2479_v33 = vld [vmem:[#allocation9 + $0x1e0] ss:$8 sps:$4 sm:$0xff]   ;;  %v425_v37 = vrot.slane %v2812_v30, %v135_v32  ;;  %v1306_v32 = vld [vmem:[%s2842_s6] sm:$0x3] }
 0x22a   :  { %v1109_v36 = vpop.f32.mrb[3].mxu1  ;;  %v2484_v34 = vld [vmem:[#allocation9 + $0x1f4] ss:$8 sps:$4 sm:$0xff]  }
 0x22b   :  { %v421_v36 = vrot.slane %v2812_v30, %v131_v29  ;;  %v2499_v29 = vld [vmem:[#allocation10 + $0x78] sm:$0xff]   ;;  %v1311_v30 = vrot.slane %v1306_v32, %v2784_v21 }
 0x22f   :  { %v1145_v41 = vpop.f32.mrb[8].mxu0 }
 0x230   :  { %v1146_v42 = vadd.f32 %v1145_v41, %v1105_v38  ;;  %v1147_v53 = vpop.f32.mrb[9].mxu0 }
 0x231   :  { %v1148_v46 = vadd.f32 %v1147_v53, %v1107_v39  ;;  %v1149_v47 = vpop.f32.mrb[10].mxu0 }
 0x232   :  { %v1234_v48 = vmax.f32 %v1146_v42, 0.0  ;;  %v1150_v49 = vpop.f32.mrb[11].mxu0 }
 0x233   :  { %v1235_v50 = vmax.f32 %v1148_v46, 0.0  ;;  %v2498_v49 = vld [vmem:[#allocation10 + $0x30] sm:$0xff]  }
 0x234   :  { %v1238_v57 = vpack.c.bf16 %v1234_v48, %v1234_v48  ;;  %v2497_v48 = vld [vmem:[#allocation10 + $0x70] sm:$0xff]  }
 0x235   :  { %v1239_v55 = vpack.c.bf16 %v1235_v50, %v1235_v50  ;;  %2148 = vmatprep.subr.bf16.mxu1 %v2497_v48  ;;  %v1315_v50 = vrot.slane %v1306_v32, %v2787_v23 }
 0x236   :  { %2149 = vmatpush3.bf16.msra.mxu1 %v2498_v49 }
 0x237   :  { %1670 = vmatprep.mubr.bf16.mxu0 %v1239_v55  ;;  %2150 = vmatprep.subr.bf16.mxu1 %v2499_v29 }
 0x238   :  { %1671 = vmatmul.mubr.bf16.vlgmr.msra.gmra.mrb[12].mxu0 %v1238_v57 }
 0x239   :  { %1680 = vmatpush1.bf16.msra.mxu0 %v2437_v56 }
 0x23a   :  { %1681 = vmatprep.subr.bf16.mxu0 %v2442_v58  ;;  %2151 = vmatpush3.bf16.msra.mxu1 %v2500_v20 }
 0x23d   :  { %1682 = vmatpush1.bf16.msra.mxu0 %v2440_v40 }
 0x23e   :  { %1683 = vmatprep.subr.bf16.mxu0 %v2445_v61 }
 0x241   :  { %1684 = vmatpush1.bf16.msra.mxu0 %v2443_v63 }
 0x242   :  { %1685 = vmatprep.subr.bf16.mxu0 %v2448_v0 }
 0x245   :  { %1686 = vmatpush1.bf16.msra.mxu0 %v2446_v3 }
 0x246   :  { %1687 = vmatprep.subr.bf16.mxu0 %v2451_v4 }
 0x249   :  { %1688 = vmatpush1.bf16.msra.mxu0 %v2449_v6 }
 0x24a   :  { %1689 = vmatprep.subr.bf16.mxu0 %v2454_v7 }
 0x24d   :  { %1690 = vmatpush1.bf16.msra.mxu0 %v2452_v8 }
 0x24e   :  { %1691 = vmatprep.subr.bf16.mxu0 %v2457_v9 }
 0x251   :  { %1692 = vmatpush1.bf16.msra.mxu0 %v2455_v10 }
 0x252   :  { %1693 = vmatprep.subr.bf16.mxu0 %v2460_v11 }
 0x255   :  { %1694 = vmatpush1.bf16.msra.mxu0 %v2458_v12 }
 0x256   :  { %1695 = vmatprep.subr.bf16.mxu0 %v2463_v13 }
 0x259   :  { %1696 = vmatpush1.bf16.msra.mxu0 %v2461_v14 }
 0x25a   :  { %1697 = vmatprep.subr.bf16.mxu0 %v2466_v15 }
 0x25d   :  { %1698 = vmatpush1.bf16.msra.mxu0 %v2464_v16 }
 0x25e   :  { %1699 = vmatprep.subr.bf16.mxu0 %v2469_v17 }
 0x261   :  { %1700 = vmatpush1.bf16.msra.mxu0 %v2467_v18 }
 0x262   :  { %1701 = vmatprep.subr.bf16.mxu0 %v2472_v22 }
 0x265   :  { %1702 = vmatpush1.bf16.msra.mxu0 %v2470_v24 }
 0x266   :  { %1703 = vmatprep.subr.bf16.mxu0 %v2475_v25 }
 0x269   :  { %1704 = vmatpush1.bf16.msra.mxu0 %v2473_v26 }
 0x26a   :  { %1705 = vmatprep.subr.bf16.mxu0 %v2478_v27 }
 0x26d   :  { %1706 = vmatpush1.bf16.msra.mxu0 %v2476_v28 }
 0x26e   :  { %1707 = vmatprep.subr.bf16.mxu0 %v2481_v31 }
 0x271   :  { %1708 = vmatpush1.bf16.msra.mxu0 %v2479_v33 }
 0x272   :  { %1709 = vmatprep.subr.bf16.mxu0 %v2484_v34 }
 0x275   :  { %1710 = vmatpush1.bf16.msra.mxu0 %v2482_v35 }
 0x2a7   :  { %v1227_v38 = vpop.f32.mrb[4].mxu1 }
 0x2a8   :  { %v2162_v39 = vadd.f32 %v1227_v38, %v421_v36  ;;  %v1229_v41 = vpop.f32.mrb[5].mxu1 }
 0x2a9   :  { %v2163_v42 = vadd.f32 %v1229_v41, %v425_v37  ;;  %v1231_v53 = vpop.f32.mrb[6].mxu1 }
 0x2aa   :  { %v1236_v43 = vmax.f32 %v2162_v39, 0.0  ;;  %v1232_v44 = vpop.f32.mrb[7].mxu1 }
 0x2ab   :  { %v1237_v45 = vmax.f32 %v2163_v42, 0.0 }
 0x2ac   :  { %v1240_v47 = vpack.c.bf16 %v1236_v43, %v1236_v43 }
 0x2ad   :  { %v1241_v46 = vpack.c.bf16 %v1237_v45, %v1237_v45 }
 0x2af   :  { %1711 = vmatprep.mubr.bf16.mxu0 %v1241_v46 }
 0x2b0   :  { %1712 = vmatmul.mubr.bf16.vlgmr.msra.gmra.mrb[12].mxu0 %v1240_v47 }
 0x383   :  { %v1713_v51 = vpop.f32.mrb[12].mxu0 }
 0x384   :  { %v2164_v52 = vadd.f32 %v1713_v51, %v1311_v30  ;;  %v1715_v55 = vpop.f32.mrb[13].mxu0 }
 0x385   :  { %v2165_v56 = vadd.f32 %v1715_v55, %v1315_v50  ;;  %v1717_v57 = vpop.f32.mrb[14].mxu0 }
 0x386   :  { %v1720_v58 = vmax.f32 %v2164_v52, 0.0  ;;  %v1718_v59 = vpop.f32.mrb[15].mxu0 }
 0x387   :  { %v1721_v60 = vmax.f32 %v2165_v56, 0.0 }
 0x388   :  { %v1722_v61 = vpack.c.bf16 %v1720_v58, %v1720_v58 }
 0x389   :  { %v1723_v40 = vpack.c.bf16 %v1721_v60, %v1721_v60 }
 0x38b   :  { %1891 = vmatprep.mubr.bf16.mxu1 %v1723_v40 }
 0x38c   :  { %1892 = vmatmul.mubr.bf16.vlgmr.msra.gmra.mrb[8].mxu1 %v1722_v61 }
 0x45f   :  { %v2152_v54 = vpop.f32.mrb[8].mxu1 }
 0x460   :  { %v2153_v21 = vpop.f32.mrb[9].mxu1 }
 0x461   :  { %v2154_v63 = vadd.f32 %v2153_v21, %v2152_v54  ;;  %v2155_v23 = vpop.f32.mrb[10].mxu1 }
 0x462   :  { %v2156_v0 = vpop.f32.mrb[11].mxu1 }
 0x463   :  { %v1894_v1 = vadd.f32 %v2154_v63, %v2119_v62 }
 0x465   :  { %2501 = vtanh.f32 %v1894_v1 }
 0x46f   :  { %v2502_v3 = vpop.eup %2501 }
 0x470   :  { %v1905_v4 = vmul.f32 3.5, %v2502_v3 }
 0x472   :  { %v1906_v5 = vadd.f32 -1.5, %v1905_v4 }
 0x474   :  { %v1907_v6 = vsel %vm1903_vm4, %v1906_v5, %v1894_v1 }
 0x475   :  { %1908 = vst [vmem:[%s2845_s9] sm:$0xff] %v1907_v6 }
 0x476   :  { %1913 = vsyncpa [#allocation3], 1 }
 0x477   :  { %1914 = vsyncpa [#allocation5], 1 }
 0x478   :  { %1915 = vsyncpa [#allocation8], 1 }
 0x479   :  { %1916 = vsyncpa [#allocation11], 1 }

</bundles_post_ra>
